<compile_context>
chip_gen: v7x
topology: tpu7x:2x2x1
jax: 0.10.0
libtpu: 0.0.40
codegen_flags: <defaults>
</compile_context>

<pallas_src>
import math

import numpy as np

import jax
import jax.numpy as jnp
from jax import lax
from jax.experimental import pallas as pl
from jax.experimental.pallas import tpu as pltpu


_BINOMIAL = {
    1: [1.0],
    2: [1.0, 1.0],
    3: [1.0, 2.0, 1.0],
    4: [1.0, 3.0, 3.0, 1.0],
    5: [1.0, 4.0, 6.0, 4.0, 1.0],
    6: [1.0, 5.0, 10.0, 10.0, 5.0, 1.0],
    7: [1.0, 6.0, 15.0, 20.0, 15.0, 6.0, 1.0],
}

_PAD_MODE = {
    "refl": "reflect",
    "reflect": "reflect",
    "repl": "edge",
    "replicate": "edge",
    "zero": "constant",
}


def _cdiv(a, b):
    return -(-a // b)


def _round_up(a, m):
    return _cdiv(a, m) * m


def _fused_blur_matrix(filt_size, out_size, in_size, pad_beg, stride, mode):
    """Decimating blur matrix with the padding folded in (float64, exact).

    (A @ x)[o] == sum_d a_norm[d] * pad(x)[stride*o + d] for a 1-D signal x of
    length `in_size`, where pad() applies `mode` padding of pad_beg on the left."""
    a = np.asarray(_BINOMIAL[filt_size], dtype=np.float64)
    a = a / a.sum()
    A = np.zeros((out_size, in_size), dtype=np.float64)
    for o in range(out_size):
        for d in range(filt_size):
            p = stride * o + d - pad_beg          # index into the *unpadded* signal
            if mode == "reflect":                 # PyTorch ReflectionPad2d semantics
                if in_size == 1:
                    src = 0
                else:
                    src = p
                    while src < 0 or src >= in_size:
                        if src < 0:
                            src = -src
                        if src >= in_size:
                            src = 2 * (in_size - 1) - src
            elif mode == "edge":                  # ReplicationPad2d
                src = min(max(p, 0), in_size - 1)
            else:                                 # ZeroPad2d
                if p < 0 or p >= in_size:
                    continue
                src = p
            A[o, src] += a[d]
    return A


def _generation_params():
    """(vmem_budget_bytes, vmem_capacity_bytes, tensorcores_per_chip) -- per generation."""
    kind = ""
    try:
        kind = jax.devices()[0].device_kind.lower()
    except Exception:
        pass
    vmem_cap = None
    try:
        vmem_cap = int(getattr(pltpu.get_tpu_info(), "vmem_capacity_bytes", 0)) or None
    except Exception:
        vmem_cap = None

    if "v7" in kind:                               # 64 MiB VMEM per TensorCore, 2 TCs/chip
        cap = vmem_cap or (64 << 20)
        budget, cores = 22 << 20, 2
    elif ("v5 lite" in kind) or ("v5e" in kind) or ("v5litepod" in kind):
        cap = vmem_cap or (128 << 20)              # v5e: modest blocks + explicit limit
        budget, cores = 12 << 20, 1
    elif "v6" in kind:                             # v6e: 128 MiB VMEM, single TC
        cap = vmem_cap or (128 << 20)
        budget, cores = 48 << 20, 1
    else:                                          # v4/v5p/unknown: conservative
        cap = vmem_cap or (64 << 20)
        budget, cores = 24 << 20, 1
    budget = max(4 << 20, min(budget, (cap * 2) // 5))
    return budget, cap, cores


def _choose_tbc(BC, max_tbc, cores):
    """Images per grid step, honouring a per-core step floor and preferring clean splits."""
    max_tbc = max(1, min(max_tbc, BC))
    # >= 2 grid steps per TensorCore on multi-TC (v7x) parts so block double-buffering
    # has something to overlap; no artificial floor on single-TC parts (v5e/v6e).
    min_chunks = min(BC, 2 * cores) if cores > 1 else 1
    if min_chunks > 1:
        max_tbc = max(1, min(max_tbc, (BC - 1) // (min_chunks - 1)))
    best, best_score = max_tbc, None
    for tbc in range(max_tbc, max(1, max_tbc // 2) - 1, -1):
        n = _cdiv(BC, tbc)
        score = ((cores == 1) or (n % cores == 0),   # even split across TensorCores
                 BC % tbc == 0,                      # divisor of BC: no ragged tail
                 tbc)                                # otherwise: fewest grid steps
        if best_score is None or score > best_score:
            best, best_score = tbc, score
    return best


def _plan(BC, H, W, H_out, W_out, x_dtype, compute_dtype, max_images_per_block=None):
    """Pick TBC (images per grid step) and a vmem_limit from a per-generation budget."""
    x_bytes = jnp.dtype(x_dtype).itemsize
    cdt_bytes = jnp.dtype(compute_dtype).itemsize
    row_in = 8 * max(1, 4 // x_bytes)        # sublane packing of the input/output blocks
    row_cdt = 8 * max(1, 4 // cdt_bytes)
    budget, vmem_cap, cores = _generation_params()

    Wr, Wor = _round_up(W, 128), _round_up(W_out, 128)
    per_img = (
        2 * _round_up(H, row_in) * Wr * x_bytes           # double-buffered input block
        + 2 * _round_up(H_out, row_in) * Wor * x_bytes    # double-buffered output block
        + _round_up(H, row_cdt) * Wor * cdt_bytes         # u scratch (column-pass result)
        + _round_up(H, 8) * Wor * 4                       # transient f32 column-pass acc
    )
    resident = (
        (_round_up(H_out, row_cdt) * _round_up(H, 128)
         + _round_up(W, row_cdt) * Wor) * cdt_bytes       # A_h, A_w^T (grid-resident)
        + _round_up(H_out, 8) * Wor * 4                   # per-image f32 row-pass result
    )
    max_tbc = max(1, (budget - resident) // per_img)
    if max_images_per_block is not None:
        max_tbc = max(1, min(max_tbc, max_images_per_block))
    tbc = _choose_tbc(BC, max_tbc, cores)
    n_chunks = _cdiv(BC, tbc)

    # Explicit VMEM limit: actual per-step footprint + resident weights + headroom, so
    # the larger per-generation budgets actually take effect (and v5e's 16 MiB scoped
    # default never silently caps the schedule).
    need = per_img * tbc + resident
    vmem_limit = int(min(vmem_cap, max(16 << 20, need + max(4 << 20, need // 4))))
    return tbc, n_chunks, vmem_limit, row_in


def _make_blur_kernel(TBC, H, W, H_out, W_out, fused_cols, unroll):
    """Per-chunk kernel: column pass, then a per-image row pass, all on the MXU."""

    def _row_pass(b, ah, u_b, o_ref):
        o = jnp.dot(ah, u_b, preferred_element_type=jnp.float32)       # (H_out, W_out)
        o_ref[pl.ds(b, 1), :, :] = o.astype(o_ref.dtype).reshape(1, H_out, W_out)

    if fused_cols:

        def kernel(x_ref, ah_ref, awt_ref, o_ref, u_ref):
            # Column pass: ONE wide-M MXU matmul over all TBC*H rows.  The
            # (TBC, H, W) -> (TBC*H, W) collapse is layout-free because H is a multiple
            # of this dtype's sublane packing.  The result is staged in a VMEM scratch
            # in compute dtype -- no full-chunk f32 temp or broadcast A_h copies.
            u_ref[...] = jnp.dot(
                x_ref[...].reshape(TBC * H, W), awt_ref[...],
                preferred_element_type=jnp.float32).astype(u_ref.dtype)
            ah = ah_ref[...]

            def body(b, carry):
                start = b * H
                if not isinstance(start, int):
                    start = pl.multiple_of(start, 8)   # H % 8 == 0 on this path
                _row_pass(b, ah, u_ref[pl.ds(start, H), :], o_ref)
                return carry

            if unroll:
                for b in range(TBC):
                    body(b, 0)
            else:
                lax.fori_loop(0, TBC, body, 0)

    else:

        def kernel(x_ref, ah_ref, awt_ref, o_ref):
            # H is not a multiple of the sublane packing: run both passes per image.
            # Avoids a hidden in-VMEM relayout of the block and the old broadcast-awt
            # einsum whose VMEM was never budgeted.  No host-side H re-pad (HBM copy).
            ah = ah_ref[...]
            awt = awt_ref[...]
            cdt = awt.dtype

            def body(b, carry):
                x_b = x_ref[pl.ds(b, 1), :, :].reshape(H, W)
                u_b = jnp.dot(x_b, awt, preferred_element_type=jnp.float32).astype(cdt)
                _row_pass(b, ah, u_b, o_ref)
                return carry

            if unroll:
                for b in range(TBC):
                    body(b, 0)
            else:
                lax.fori_loop(0, TBC, body, 0)

    return kernel


def downsample_antialias(x, pad_type="reflect", filt_size=3, stride=2, pad_off=0,
                         *, _max_images_per_block=None, _force_loop=False):
    """JAX/Pallas equivalent of Downsample_AntiAlias.forward (x is NCHW)."""
    B, C, H, W = x.shape
    pad_beg = int(1.0 * (filt_size - 1) / 2) + pad_off
    pad_end = int(math.ceil(1.0 * (filt_size - 1) / 2)) + pad_off
    mode = _PAD_MODE[pad_type]

    if filt_size == 1:
        # Pure slicing path of the PyTorch module -- no compute, plain JAX.
        if pad_off == 0:
            return x[:, :, ::stride, ::stride]
        xp = jnp.pad(x, ((0, 0), (0, 0), (pad_beg, pad_end), (pad_beg, pad_end)),
                     mode=mode)
        return xp[:, :, ::stride, ::stride]

    H_pad = H + pad_beg + pad_end
    W_pad = W + pad_beg + pad_end
    H_out = (H_pad - filt_size) // stride + 1
    W_out = (W_pad - filt_size) // stride + 1

    # bf16-native MXU path for bf16 activations; binomial/padding weights are exact in bf16.
    compute_dtype = jnp.bfloat16 if x.dtype == jnp.bfloat16 else jnp.float32

    # Padding is linear -> fold it into the decimation matrices (built in float64).
    A_h = _fused_blur_matrix(filt_size, H_out, H, pad_beg, stride, mode)   # (H_out, H)
    A_w = _fused_blur_matrix(filt_size, W_out, W, pad_beg, stride, mode)   # (W_out, W)
    ah = jnp.asarray(A_h, dtype=compute_dtype)
    awt = jnp.asarray(np.ascontiguousarray(A_w.T), dtype=compute_dtype)    # (W, W_out)

    BC = B * C
    xr = x.reshape(BC, H, W)

    TBC, n_chunks, vmem_limit, row_in = _plan(
        BC, H, W, H_out, W_out, x.dtype, compute_dtype, _max_images_per_block)
    fused_cols = (H % row_in == 0)        # layout-free (TBC,H,W) -> (TBC*H,W) collapse
    unroll = (TBC <= 8) and not _force_loop

    kernel = _make_blur_kernel(TBC, H, W, H_out, W_out, fused_cols, unroll)
    scratch_shapes = ([pltpu.VMEM((TBC * H, W_out), compute_dtype)] if fused_cols else [])

    x_bytes = jnp.dtype(x.dtype).itemsize
    flops = 2 * BC * H * W * W_out + 2 * BC * H_out * H * W_out
    bytes_accessed = (BC * H * W * x_bytes
                      + BC * H_out * W_out * x_bytes
                      + (H_out * H + W * W_out) * jnp.dtype(compute_dtype).itemsize)

    out = pl.pallas_call(
        kernel,
        out_shape=jax.ShapeDtypeStruct((BC, H_out, W_out), x.dtype),
        grid=(n_chunks,),                                  # last block may be ragged
        in_specs=[
            pl.BlockSpec((TBC, H, W), lambda i: (i, 0, 0)),
            pl.BlockSpec((H_out, H), lambda i: (0, 0)),    # resident across the grid
            pl.BlockSpec((W, W_out), lambda i: (0, 0)),    # resident across the grid
        ],
        out_specs=pl.BlockSpec((TBC, H_out, W_out), lambda i: (i, 0, 0)),
        scratch_shapes=scratch_shapes,
        compiler_params=pltpu.CompilerParams(
            dimension_semantics=("parallel",),
            vmem_limit_bytes=vmem_limit),
        cost_estimate=pl.CostEstimate(flops=flops, transcendentals=0,
                                      bytes_accessed=bytes_accessed),
    )(xr, ah, awt)

    return out.reshape(B, C, H_out, W_out)


def _reference(x, pad_type="reflect", filt_size=3, stride=2, pad_off=0):
    """Pure-JAX reference mirroring the PyTorch forward (pad + depthwise conv)."""
    B, C, H, W = x.shape
    pad_beg = int(1.0 * (filt_size - 1) / 2) + pad_off
    pad_end = int(math.ceil(1.0 * (filt_size - 1) / 2)) + pad_off
    xp = jnp.pad(x, ((0, 0), (0, 0), (pad_beg, pad_end), (pad_beg, pad_end)),
                 mode=_PAD_MODE[pad_type])
    a = np.asarray(_BINOMIAL[filt_size], dtype=np.float64)
    filt = a[:, None] * a[None, :]
    filt = (filt / filt.sum()).astype(np.float32)
    w = jnp.broadcast_to(jnp.asarray(filt)[None, None], (C, 1, filt_size, filt_size))
    return jax.lax.conv_general_dilated(
        xp, w.astype(x.dtype), window_strides=(stride, stride), padding="VALID",
        feature_group_count=C,
        dimension_numbers=("NCHW", "OIHW", "NCHW"))


if __name__ == "__main__":
    key = jax.random.PRNGKey(0)
    x = jax.random.normal(key, (2, 4, 16, 16), dtype=jnp.float32)

    # Default module config: reflect pad, filt_size=3, stride=2.
    y = downsample_antialias(x)
    jax.block_until_ready(y)
    assert y.shape == (2, 4, 8, 8), y.shape
    y_ref = _reference(x)
    jax.block_until_ready(y_ref)
    assert np.allclose(np.asarray(y), np.asarray(y_ref), atol=1e-5, rtol=1e-5), (
        float(np.max(np.abs(np.asarray(y) - np.asarray(y_ref)))))

    # Other pad modes / filter sizes (exercises the fused padding matrices).
    for pad_type, filt_size in (("replicate", 5), ("zero", 4)):
        y = downsample_antialias(x, pad_type=pad_type, filt_size=filt_size)
        y_ref = _reference(x, pad_type=pad_type, filt_size=filt_size)
        jax.block_until_ready((y, y_ref))
        assert np.allclose(np.asarray(y), np.asarray(y_ref), atol=1e-5, rtol=1e-5), (
            pad_type, filt_size,
            float(np.max(np.abs(np.asarray(y) - np.asarray(y_ref)))))

    # bf16 activations (bf16-native MXU path; compared against the f32 reference).
    xb = x.astype(jnp.bfloat16)
    yb = downsample_antialias(xb)
    jax.block_until_ready(yb)
    assert yb.dtype == jnp.bfloat16
    assert np.allclose(np.asarray(yb, dtype=np.float32), np.asarray(_reference(x)),
                       atol=5e-2, rtol=5e-2)

    # H not a multiple of the sublane packing -> per-image (non-fused) path.
    x2 = jax.random.normal(jax.random.PRNGKey(1), (2, 3, 12, 20), dtype=jnp.float32)
    y2 = downsample_antialias(x2)
    y2_ref = _reference(x2)
    jax.block_until_ready((y2, y2_ref))
    assert np.allclose(np.asarray(y2), np.asarray(y2_ref), atol=1e-5, rtol=1e-5)

    # Ragged BC (BC % TBC != 0, no host pad) and the in-kernel fori_loop row pass.
    x3 = jax.random.normal(jax.random.PRNGKey(2), (7, 1, 16, 16), dtype=jnp.float32)
    y3 = downsample_antialias(x3, _max_images_per_block=4, _force_loop=True)
    y3_ref = _reference(x3)
    jax.block_until_ready((y3, y3_ref))
    assert np.allclose(np.asarray(y3), np.asarray(y3_ref), atol=1e-5, rtol=1e-5)

    print("KERNEL_OK")
</pallas_src>

<mosaic_0001>
module attributes {stable_mosaic.version = 11 : i64} {
  func.func @kernel(%arg0: i32, %arg1: memref<8x16x16xf32, #tpu.memory_space<vmem>>, %arg2: memref<8x16xf32, #tpu.memory_space<vmem>>, %arg3: memref<16x8xf32, #tpu.memory_space<vmem>>, %arg4: memref<8x8x8xf32, #tpu.memory_space<vmem>>, %arg5: memref<128x8xf32, #tpu.memory_space<vmem>>) attributes {dimension_semantics = [#tpu.dimension_semantics<parallel>], iteration_bounds = array<i64: 1>, scalar_prefetch = 0 : i64, scratch_operands = 1 : i64, tpu.core_type = #tpu.core_type<tc>, window_params = [{transform_indices = @transform_0, window_bounds = array<i64: 8, 16, 16>}, {pipeline_mode = #tpu.pipeline_mode<synchronous>, transform_indices = @transform_1, window_bounds = array<i64: 8, 16>}, {pipeline_mode = #tpu.pipeline_mode<synchronous>, transform_indices = @transform_2, window_bounds = array<i64: 16, 8>}, {transform_indices = @transform_3, window_bounds = array<i64: 8, 8, 8>}]} {
    %c0 = arith.constant 0 : index
    %c0_0 = arith.constant 0 : index
    %c0_1 = arith.constant 0 : index
    %0 = vector.load %arg1[%c0, %c0_0, %c0_1] : memref<8x16x16xf32, #tpu.memory_space<vmem>>, vector<8x16x16xf32>
    %1 = vector.shape_cast %0 : vector<8x16x16xf32> to vector<128x16xf32>
    %c0_2 = arith.constant 0 : index
    %c0_3 = arith.constant 0 : index
    %2 = vector.load %arg3[%c0_2, %c0_3] : memref<16x8xf32, #tpu.memory_space<vmem>>, vector<16x8xf32>
    %cst = arith.constant dense<0.000000e+00> : vector<128x8xf32>
    %3 = tpu.matmul %1, %2, %cst {dimension_numbers = #tpu.dot_dimension_numbers<[1], [0], [0], [1], [0, 0, 1, 1], [], []>} : vector<128x16xf32>, vector<16x8xf32>, vector<128x8xf32> -> vector<128x8xf32>
    %c0_4 = arith.constant 0 : index
    %c0_5 = arith.constant 0 : index
    %4 = vector.load %arg5[%c0_4, %c0_5] : memref<128x8xf32, #tpu.memory_space<vmem>>, vector<128x8xf32>
    tpu.vector_store %arg5[%c0_4, %c0_5], %3 {strides = array<i32>} : memref<128x8xf32, #tpu.memory_space<vmem>>, vector<128x8xf32>,
    %c0_6 = arith.constant 0 : index
    %c0_7 = arith.constant 0 : index
    %5 = vector.load %arg2[%c0_6, %c0_7] : memref<8x16xf32, #tpu.memory_space<vmem>>, vector<8x16xf32>
    %c0_8 = arith.constant 0 : index
    %c0_9 = arith.constant 0 : index
    %6 = vector.load %arg5[%c0_8, %c0_9] : memref<128x8xf32, #tpu.memory_space<vmem>>, vector<16x8xf32>
    %cst_10 = arith.constant dense<0.000000e+00> : vector<8x8xf32>
    %7 = tpu.matmul %5, %6, %cst_10 {dimension_numbers = #tpu.dot_dimension_numbers<[1], [0], [0], [1], [0, 0, 1, 1], [], []>} : vector<8x16xf32>, vector<16x8xf32>, vector<8x8xf32> -> vector<8x8xf32>
    %8 = vector.shape_cast %7 : vector<8x8xf32> to vector<1x8x8xf32>
    %c0_11 = arith.constant 0 : index
    %c0_12 = arith.constant 0 : index
    %c0_13 = arith.constant 0 : index
    %9 = vector.load %arg4[%c0_11, %c0_12, %c0_13] : memref<8x8x8xf32, #tpu.memory_space<vmem>>, vector<1x8x8xf32>
    tpu.vector_store %arg4[%c0_11, %c0_12, %c0_13], %8 {strides = array<i32>} : memref<8x8x8xf32, #tpu.memory_space<vmem>>, vector<1x8x8xf32>,
    %c16 = arith.constant 16 : index
    %c0_14 = arith.constant 0 : index
    %10 = vector.load %arg5[%c16, %c0_14] : memref<128x8xf32, #tpu.memory_space<vmem>>, vector<16x8xf32>
    %cst_15 = arith.constant dense<0.000000e+00> : vector<8x8xf32>
    %11 = tpu.matmul %5, %10, %cst_15 {dimension_numbers = #tpu.dot_dimension_numbers<[1], [0], [0], [1], [0, 0, 1, 1], [], []>} : vector<8x16xf32>, vector<16x8xf32>, vector<8x8xf32> -> vector<8x8xf32>
    %12 = vector.shape_cast %11 : vector<8x8xf32> to vector<1x8x8xf32>
    %c1 = arith.constant 1 : index
    %c0_16 = arith.constant 0 : index
    %c0_17 = arith.constant 0 : index
    %13 = vector.load %arg4[%c1, %c0_16, %c0_17] : memref<8x8x8xf32, #tpu.memory_space<vmem>>, vector<1x8x8xf32>
    tpu.vector_store %arg4[%c1, %c0_16, %c0_17], %12 {strides = array<i32>} : memref<8x8x8xf32, #tpu.memory_space<vmem>>, vector<1x8x8xf32>,
    %c32 = arith.constant 32 : index
    %c0_18 = arith.constant 0 : index
    %14 = vector.load %arg5[%c32, %c0_18] : memref<128x8xf32, #tpu.memory_space<vmem>>, vector<16x8xf32>
    %cst_19 = arith.constant dense<0.000000e+00> : vector<8x8xf32>
    %15 = tpu.matmul %5, %14, %cst_19 {dimension_numbers = #tpu.dot_dimension_numbers<[1], [0], [0], [1], [0, 0, 1, 1], [], []>} : vector<8x16xf32>, vector<16x8xf32>, vector<8x8xf32> -> vector<8x8xf32>
    %16 = vector.shape_cast %15 : vector<8x8xf32> to vector<1x8x8xf32>
    %c2 = arith.constant 2 : index
    %c0_20 = arith.constant 0 : index
    %c0_21 = arith.constant 0 : index
    %17 = vector.load %arg4[%c2, %c0_20, %c0_21] : memref<8x8x8xf32, #tpu.memory_space<vmem>>, vector<1x8x8xf32>
    tpu.vector_store %arg4[%c2, %c0_20, %c0_21], %16 {strides = array<i32>} : memref<8x8x8xf32, #tpu.memory_space<vmem>>, vector<1x8x8xf32>,
    %c48 = arith.constant 48 : index
    %c0_22 = arith.constant 0 : index
    %18 = vector.load %arg5[%c48, %c0_22] : memref<128x8xf32, #tpu.memory_space<vmem>>, vector<16x8xf32>
    %cst_23 = arith.constant dense<0.000000e+00> : vector<8x8xf32>
    %19 = tpu.matmul %5, %18, %cst_23 {dimension_numbers = #tpu.dot_dimension_numbers<[1], [0], [0], [1], [0, 0, 1, 1], [], []>} : vector<8x16xf32>, vector<16x8xf32>, vector<8x8xf32> -> vector<8x8xf32>
    %20 = vector.shape_cast %19 : vector<8x8xf32> to vector<1x8x8xf32>
    %c3 = arith.constant 3 : index
    %c0_24 = arith.constant 0 : index
    %c0_25 = arith.constant 0 : index
    %21 = vector.load %arg4[%c3, %c0_24, %c0_25] : memref<8x8x8xf32, #tpu.memory_space<vmem>>, vector<1x8x8xf32>
    tpu.vector_store %arg4[%c3, %c0_24, %c0_25], %20 {strides = array<i32>} : memref<8x8x8xf32, #tpu.memory_space<vmem>>, vector<1x8x8xf32>,
    %c64 = arith.constant 64 : index
    %c0_26 = arith.constant 0 : index
    %22 = vector.load %arg5[%c64, %c0_26] : memref<128x8xf32, #tpu.memory_space<vmem>>, vector<16x8xf32>
    %cst_27 = arith.constant dense<0.000000e+00> : vector<8x8xf32>
    %23 = tpu.matmul %5, %22, %cst_27 {dimension_numbers = #tpu.dot_dimension_numbers<[1], [0], [0], [1], [0, 0, 1, 1], [], []>} : vector<8x16xf32>, vector<16x8xf32>, vector<8x8xf32> -> vector<8x8xf32>
    %24 = vector.shape_cast %23 : vector<8x8xf32> to vector<1x8x8xf32>
    %c4 = arith.constant 4 : index
    %c0_28 = arith.constant 0 : index
    %c0_29 = arith.constant 0 : index
    %25 = vector.load %arg4[%c4, %c0_28, %c0_29] : memref<8x8x8xf32, #tpu.memory_space<vmem>>, vector<1x8x8xf32>
    tpu.vector_store %arg4[%c4, %c0_28, %c0_29], %24 {strides = array<i32>} : memref<8x8x8xf32, #tpu.memory_space<vmem>>, vector<1x8x8xf32>,
    %c80 = arith.constant 80 : index
    %c0_30 = arith.constant 0 : index
    %26 = vector.load %arg5[%c80, %c0_30] : memref<128x8xf32, #tpu.memory_space<vmem>>, vector<16x8xf32>
    %cst_31 = arith.constant dense<0.000000e+00> : vector<8x8xf32>
    %27 = tpu.matmul %5, %26, %cst_31 {dimension_numbers = #tpu.dot_dimension_numbers<[1], [0], [0], [1], [0, 0, 1, 1], [], []>} : vector<8x16xf32>, vector<16x8xf32>, vector<8x8xf32> -> vector<8x8xf32>
    %28 = vector.shape_cast %27 : vector<8x8xf32> to vector<1x8x8xf32>
    %c5 = arith.constant 5 : index
    %c0_32 = arith.constant 0 : index
    %c0_33 = arith.constant 0 : index
    %29 = vector.load %arg4[%c5, %c0_32, %c0_33] : memref<8x8x8xf32, #tpu.memory_space<vmem>>, vector<1x8x8xf32>
    tpu.vector_store %arg4[%c5, %c0_32, %c0_33], %28 {strides = array<i32>} : memref<8x8x8xf32, #tpu.memory_space<vmem>>, vector<1x8x8xf32>,
    %c96 = arith.constant 96 : index
    %c0_34 = arith.constant 0 : index
    %30 = vector.load %arg5[%c96, %c0_34] : memref<128x8xf32, #tpu.memory_space<vmem>>, vector<16x8xf32>
    %cst_35 = arith.constant dense<0.000000e+00> : vector<8x8xf32>
    %31 = tpu.matmul %5, %30, %cst_35 {dimension_numbers = #tpu.dot_dimension_numbers<[1], [0], [0], [1], [0, 0, 1, 1], [], []>} : vector<8x16xf32>, vector<16x8xf32>, vector<8x8xf32> -> vector<8x8xf32>
    %32 = vector.shape_cast %31 : vector<8x8xf32> to vector<1x8x8xf32>
    %c6 = arith.constant 6 : index
    %c0_36 = arith.constant 0 : index
    %c0_37 = arith.constant 0 : index
    %33 = vector.load %arg4[%c6, %c0_36, %c0_37] : memref<8x8x8xf32, #tpu.memory_space<vmem>>, vector<1x8x8xf32>
    tpu.vector_store %arg4[%c6, %c0_36, %c0_37], %32 {strides = array<i32>} : memref<8x8x8xf32, #tpu.memory_space<vmem>>, vector<1x8x8xf32>,
    %c112 = arith.constant 112 : index
    %c0_38 = arith.constant 0 : index
    %34 = vector.load %arg5[%c112, %c0_38] : memref<128x8xf32, #tpu.memory_space<vmem>>, vector<16x8xf32>
    %cst_39 = arith.constant dense<0.000000e+00> : vector<8x8xf32>
    %35 = tpu.matmul %5, %34, %cst_39 {dimension_numbers = #tpu.dot_dimension_numbers<[1], [0], [0], [1], [0, 0, 1, 1], [], []>} : vector<8x16xf32>, vector<16x8xf32>, vector<8x8xf32> -> vector<8x8xf32>
    %36 = vector.shape_cast %35 : vector<8x8xf32> to vector<1x8x8xf32>
    %c7 = arith.constant 7 : index
    %c0_40 = arith.constant 0 : index
    %c0_41 = arith.constant 0 : index
    %37 = vector.load %arg4[%c7, %c0_40, %c0_41] : memref<8x8x8xf32, #tpu.memory_space<vmem>>, vector<1x8x8xf32>
    tpu.vector_store %arg4[%c7, %c0_40, %c0_41], %36 {strides = array<i32>} : memref<8x8x8xf32, #tpu.memory_space<vmem>>, vector<1x8x8xf32>,
    return
  }
  func.func @transform_0(%arg0: i32) -> (i32, i32, i32) {
    %c0_i32 = arith.constant 0 : i32
    %c0_i32_0 = arith.constant 0 : i32
    %c0_i32_1 = arith.constant 0 : i32
    return %arg0, %c0_i32, %c0_i32_0 : i32, i32, i32
  }
  func.func @transform_1(%arg0: i32) -> (i32, i32) {
    %c0_i32 = arith.constant 0 : i32
    %c0_i32_0 = arith.constant 0 : i32
    %c0_i32_1 = arith.constant 0 : i32
    return %c0_i32, %c0_i32_0 : i32, i32
  }
  func.func @transform_2(%arg0: i32) -> (i32, i32) {
    %c0_i32 = arith.constant 0 : i32
    %c0_i32_0 = arith.constant 0 : i32
    %c0_i32_1 = arith.constant 0 : i32
    return %c0_i32, %c0_i32_0 : i32, i32
  }
  func.func @transform_3(%arg0: i32) -> (i32, i32, i32) {
    %c0_i32 = arith.constant 0 : i32
    %c0_i32_0 = arith.constant 0 : i32
    %c0_i32_1 = arith.constant 0 : i32
    return %arg0, %c0_i32, %c0_i32_0 : i32, i32, i32
  }
}

</mosaic_0001>

<bundles_post_ra>
// kernel: tpu_custom_call.1
= control target key start
LH: loop header
LB: loop body
LE: loop exit
PB: predicated region body
PF: predicated region fallthrough
CT: control target
= control target key end

     0   :  { %8 = vsyncpa [#allocation4], 0  ;;  %s1251_s0 = inlined_call_operand.hbm [shape: f32[8,16,16], index: 0, kind: input, shape index: {}]   ;;  %s1252_s1 = inlined_call_operand.vmem [shape: f32[8,16], index: 1, kind: input, shape index: {}]   ;;  %s1253_s2 = inlined_call_operand.vmem [shape: f32[16,8], index: 2, kind: input, shape index: {}]   ;;  %s1254_s3 = inlined_call_operand.hbm [shape: f32[8,8,8], index: 3, kind: output, shape index: {}]  }
   0x1   :  { %9 = vsyncpa [#allocation5], 0  ;;  %s1103_s12 = smov [#allocation3]   ;;  %s1055_s16 = scalar_lea.hbm %s1251_s0, 2048 }
   0x2   :  { %s15_s13 = sshll.u32 %s1103_s12, 4  ;;  %p1056_p0 = scmp.ne.s32.totalorder %s1251_s0, %s1055_s16  ;;  %s16_s13 = int_to_ptr.vmem [resolvable:$true] %s15_s13 }
   0x3   :  { %p1059_p1 = scmp.lt.u32.totalorder %s1055_s16, %s1251_s0 }
   0x5   :  { %p1061_p2 = pnand %p1059_p1, %p1056_p0 }
   0x7   :  { %1064 = shalt.err (!%p1061_p2)
}
   0x8   :  { %s1065_s21 = scalar_lea.vmem %s16_s13, 2048  ;;  %p1070_p4 = scmp.lt.s32.totalorder %s16_s13, %s16_s13 }
   0x9   :  { %p1066_p3 = scmp.ne.s32.totalorder %s16_s13, %s1065_s21  ;;  %p1071_p5 = scmp.lt.s32.totalorder %s1065_s21, %s1065_s21 }
   0xb   :  { %p1072_p6 = por %p1071_p5, %p1070_p4 }
   0xd   :  { %p1073_p7 = pnand %p1072_p6, %p1066_p3 }
   0xf   :  { %1076 = shalt.err (!%p1073_p7)
}
  0x10   :  { %s1104_s22 = smov 128   ;;  %s1105_s23 = smov 8  }
  0x11   :  { %21 = dma.hbm_to_vmem [thread:$0]  %s1251_s0, 2048, %s16_s13, [#allocation4], %s1104_s22, %s1104_s22, %s1105_s23  }
  0x12   :  { %1099 = dma.done.wait [#allocation4], 2048  }
  0x13   :  { %1100 = vsyncadd [#allocation4], 4294965248  ;;  %vm47_vm0 = vcmask 130048   ;;  %v45_v0 = vld [vmem:[%s1253_s2] sm:$0xff]  ;;  %v46_v1 = vld [vmem:[%s1253_s2 + $0x8] sm:$0xff]  ;;  %v1106_v19 = vmov 0.0|0.0  }
  0x14   :  { %v29_v2 = vld [vmem:[#allocation3] sm:$0xff]  ;;  %v1020_v3 = vpack.c.bf16 %v46_v1, %v45_v0  ;;  %v30_v4 = vld [vmem:[#allocation3 + $0x8] sm:$0xff]  ;;  %v31_v5 = vld [vmem:[#allocation3 + $0x10] sm:$0xff]  ;;  %1024 = vmatprep.subr.bf16.mxu1 %v1106_v19  ;;  %vm1107_vm1 = vmmov 0   ;;  %v1108_v20 = vmov 0.0   ;;  %vm241_vm2 = vcmask 64512  }
  0x15   :  { %940 = vmatprep.mubr.msk.f32.mxu0 %vm47_vm0, %v29_v2  ;;  %v32_v6 = vld [vmem:[#allocation3 + $0x18] sm:$0xff]  ;;  %v33_v7 = vld [vmem:[#allocation3 + $0x20] sm:$0xff]  ;;  %v34_v8 = vld [vmem:[#allocation3 + $0x28] sm:$0xff]  ;;  %968 = vmatprep.mubr.msk.f32.mxu1 %vm1107_vm1, %v1108_v20 }
  0x16   :  { %1021 = vmatprep.subr.bf16.mxu0 %v1020_v3  ;;  %v35_v9 = vld [vmem:[#allocation3 + $0x30] sm:$0xff]  ;;  %v36_v10 = vld [vmem:[#allocation3 + $0x38] sm:$0xff]  ;;  %v37_v11 = vld [vmem:[#allocation3 + $0x40] sm:$0xff] }
  0x17   :  { %1023 = vmatpush3.bf16.msra.mxu0 %v1020_v3  ;;  %v38_v12 = vld [vmem:[#allocation3 + $0x48] sm:$0xff]  ;;  %v39_v13 = vld [vmem:[#allocation3 + $0x50] sm:$0xff]  ;;  %v40_v14 = vld [vmem:[#allocation3 + $0x58] sm:$0xff] }
  0x18   :  { %v41_v15 = vld [vmem:[#allocation3 + $0x60] sm:$0xff]  ;;  %v42_v16 = vld [vmem:[#allocation3 + $0x68] sm:$0xff]  ;;  %v43_v17 = vld [vmem:[#allocation3 + $0x70] sm:$0xff] }
  0x19   :  { %v44_v18 = vld [vmem:[#allocation3 + $0x78] sm:$0xff]  ;;  %v1179_v31 = vld [vmem:[%s1252_s1] sm:$0xff]  ;;  %s1109_s1 = smov [#allocation6]  }
  0x1a   :  { %941 = vmatmul.mubr.msk.f32.vlgmr.msra.gmra.mrb[0].mxu0 %vm47_vm0, %v30_v4  ;;  %s858_s30 = sshll.u32 %s1109_s1, 4  ;;  %s859_s30 = int_to_ptr.vmem [resolvable:$true] %s858_s30 }
  0x1b   :  { %943 = vmatprep.mubr.msk.f32.mxu0 %vm47_vm0, %v31_v5  ;;  %s1077_s4 = scalar_lea.vmem %s859_s30, 1024  ;;  %p1082_p9 = scmp.lt.s32.totalorder %s859_s30, %s859_s30 }
  0x1c   :  { %p1078_p8 = scmp.ne.s32.totalorder %s859_s30, %s1077_s4  ;;  %p1083_p10 = scmp.lt.s32.totalorder %s1077_s4, %s1077_s4 }
  0x1e   :  { %944 = vmatmul.mubr.msk.f32.gmra.mrb[2].mxu0 %vm47_vm0, %v32_v6  ;;  %p1084_p11 = por %p1083_p10, %p1082_p9 }
  0x1f   :  { %946 = vmatprep.mubr.msk.f32.mxu0 %vm47_vm0, %v33_v7 }
  0x20   :  { %p1085_p12 = pnand %p1084_p11, %p1078_p8 }
  0x22   :  { %947 = vmatmul.mubr.msk.f32.gmra.mrb[4].mxu0 %vm47_vm0, %v34_v8 }
  0x23   :  { %949 = vmatprep.mubr.msk.f32.mxu0 %vm47_vm0, %v35_v9 }
  0x26   :  { %950 = vmatmul.mubr.msk.f32.gmra.mrb[6].mxu0 %vm47_vm0, %v36_v10 }
  0x27   :  { %952 = vmatprep.mubr.msk.f32.mxu0 %vm47_vm0, %v37_v11 }
  0x2a   :  { %953 = vmatmul.mubr.msk.f32.gmra.mrb[8].mxu0 %vm47_vm0, %v38_v12 }
  0x2b   :  { %955 = vmatprep.mubr.msk.f32.mxu0 %vm47_vm0, %v39_v13 }
  0x2e   :  { %956 = vmatmul.mubr.msk.f32.gmra.mrb[10].mxu0 %vm47_vm0, %v40_v14 }
  0x2f   :  { %958 = vmatprep.mubr.msk.f32.mxu0 %vm47_vm0, %v41_v15 }
  0x32   :  { %959 = vmatmul.mubr.msk.f32.gmra.mrb[12].mxu0 %vm47_vm0, %v42_v16 }
  0x33   :  { %961 = vmatprep.mubr.msk.f32.mxu0 %vm47_vm0, %v43_v17 }
  0x36   :  { %962 = vmatmul.mubr.msk.f32.gmra.mrb[14].mxu0 %vm47_vm0, %v44_v18 }
  0xed   :  { %v942_v21 = vpop.f32.mrb[0].mxu0 }
  0xee   :  { %243 = vst.msk [vmem:[#allocation2 + $0x8] sm:$0xff] %vm241_vm2, %v942_v21  ;;  %v162_v22 = vpop.f32.mrb[1].mxu0 }
  0xef   :  { %242 = vst.msk [vmem:[#allocation2] sm:$0xff] %vm241_vm2, %v162_v22 }
  0xf1   :  { %v945_v23 = vpop.f32.mrb[2].mxu0 }
  0xf2   :  { %245 = vst.msk [vmem:[#allocation2 + $0x18] sm:$0xff] %vm241_vm2, %v945_v23  ;;  %v172_v24 = vpop.f32.mrb[3].mxu0 }
  0xf3   :  { %244 = vst.msk [vmem:[#allocation2 + $0x10] sm:$0xff] %vm241_vm2, %v172_v24 }
  0xf5   :  { %v948_v25 = vpop.f32.mrb[4].mxu0  ;;  %v260_v26 = vld [vmem:[#allocation2 + $0x8] sm:$0xff] }
  0xf6   :  { %247 = vst.msk [vmem:[#allocation2 + $0x28] sm:$0xff] %vm241_vm2, %v948_v25  ;;  %v182_v27 = vpop.f32.mrb[5].mxu0  ;;  %v259_v28 = vld [vmem:[#allocation2] sm:$0xff] }
  0xf7   :  { %246 = vst.msk [vmem:[#allocation2 + $0x20] sm:$0xff] %vm241_vm2, %v182_v27  ;;  %v1025_v29 = vpack.c.bf16 %v260_v26, %v259_v28 }
  0xf9   :  { %v951_v30 = vpop.f32.mrb[6].mxu0  ;;  %1026 = vmatpush3.bf16.msra.mxu1 %v1025_v29  ;;  %v336_v32 = vld [vmem:[#allocation2 + $0x18] sm:$0xff] }
  0xfa   :  { %249 = vst.msk [vmem:[#allocation2 + $0x38] sm:$0xff] %vm241_vm2, %v951_v30  ;;  %v192_v33 = vpop.f32.mrb[7].mxu0  ;;  %1027 = vmatprep.subr.bf16.mxu1 %v1106_v19  ;;  %v335_v34 = vld [vmem:[#allocation2 + $0x10] sm:$0xff] }
  0xfb   :  { %248 = vst.msk [vmem:[#allocation2 + $0x30] sm:$0xff] %vm241_vm2, %v192_v33  ;;  %v1028_v35 = vpack.c.bf16 %v336_v32, %v335_v34 }
  0xfc   :  { %969 = vmatmul.mubr.msk.f32.vlgmr.msra.gmra.mrb[0].mxu1 %vm47_vm0, %v1179_v31 }
  0xfd   :  { %v954_v36 = vpop.f32.mrb[8].mxu0  ;;  %1029 = vmatpush3.bf16.msra.mxu1 %v1028_v35  ;;  %975 = vmatprep.mubr.msk.f32.mxu1 %vm1107_vm1, %v1108_v20  ;;  %v410_v37 = vld [vmem:[#allocation2 + $0x28] sm:$0xff] }
  0xfe   :  { %251 = vst.msk [vmem:[#allocation2 + $0x48] sm:$0xff] %vm241_vm2, %v954_v36  ;;  %v202_v38 = vpop.f32.mrb[9].mxu0  ;;  %1030 = vmatprep.subr.bf16.mxu1 %v1106_v19  ;;  %v409_v39 = vld [vmem:[#allocation2 + $0x20] sm:$0xff] }
  0xff   :  { %250 = vst.msk [vmem:[#allocation2 + $0x40] sm:$0xff] %vm241_vm2, %v202_v38  ;;  %v1031_v40 = vpack.c.bf16 %v410_v37, %v409_v39 }
 0x100   :  { %976 = vmatmul.mubr.msk.f32.vlgmr.msra.gmra.mrb[2].mxu1 %vm47_vm0, %v1179_v31 }
 0x101   :  { %v957_v41 = vpop.f32.mrb[10].mxu0  ;;  %1032 = vmatpush3.bf16.msra.mxu1 %v1031_v40  ;;  %982 = vmatprep.mubr.msk.f32.mxu1 %vm1107_vm1, %v1108_v20  ;;  %v484_v42 = vld [vmem:[#allocation2 + $0x38] sm:$0xff] }
 0x102   :  { %253 = vst.msk [vmem:[#allocation2 + $0x58] sm:$0xff] %vm241_vm2, %v957_v41  ;;  %v212_v43 = vpop.f32.mrb[11].mxu0  ;;  %1033 = vmatprep.subr.bf16.mxu1 %v1106_v19  ;;  %v483_v44 = vld [vmem:[#allocation2 + $0x30] sm:$0xff] }
 0x103   :  { %252 = vst.msk [vmem:[#allocation2 + $0x50] sm:$0xff] %vm241_vm2, %v212_v43  ;;  %v1034_v45 = vpack.c.bf16 %v484_v42, %v483_v44 }
 0x104   :  { %983 = vmatmul.mubr.msk.f32.vlgmr.msra.gmra.mrb[4].mxu1 %vm47_vm0, %v1179_v31 }
 0x105   :  { %v960_v46 = vpop.f32.mrb[12].mxu0  ;;  %1035 = vmatpush3.bf16.msra.mxu1 %v1034_v45  ;;  %989 = vmatprep.mubr.msk.f32.mxu1 %vm1107_vm1, %v1108_v20  ;;  %v558_v47 = vld [vmem:[#allocation2 + $0x48] sm:$0xff] }
 0x106   :  { %255 = vst.msk [vmem:[#allocation2 + $0x68] sm:$0xff] %vm241_vm2, %v960_v46  ;;  %v222_v48 = vpop.f32.mrb[13].mxu0  ;;  %1036 = vmatprep.subr.bf16.mxu1 %v1106_v19  ;;  %v557_v49 = vld [vmem:[#allocation2 + $0x40] sm:$0xff] }
 0x107   :  { %254 = vst.msk [vmem:[#allocation2 + $0x60] sm:$0xff] %vm241_vm2, %v222_v48  ;;  %v1037_v50 = vpack.c.bf16 %v558_v47, %v557_v49 }
 0x108   :  { %990 = vmatmul.mubr.msk.f32.vlgmr.msra.gmra.mrb[6].mxu1 %vm47_vm0, %v1179_v31 }
 0x109   :  { %v963_v51 = vpop.f32.mrb[14].mxu0  ;;  %1038 = vmatpush3.bf16.msra.mxu1 %v1037_v50  ;;  %996 = vmatprep.mubr.msk.f32.mxu1 %vm1107_vm1, %v1108_v20  ;;  %v632_v52 = vld [vmem:[#allocation2 + $0x58] sm:$0xff] }
 0x10a   :  { %257 = vst.msk [vmem:[#allocation2 + $0x78] sm:$0xff] %vm241_vm2, %v963_v51  ;;  %v232_v53 = vpop.f32.mrb[15].mxu0  ;;  %1039 = vmatprep.subr.bf16.mxu1 %v1106_v19  ;;  %v631_v54 = vld [vmem:[#allocation2 + $0x50] sm:$0xff] }
 0x10b   :  { %256 = vst.msk [vmem:[#allocation2 + $0x70] sm:$0xff] %vm241_vm2, %v232_v53  ;;  %v1040_v55 = vpack.c.bf16 %v632_v52, %v631_v54 }
 0x10c   :  { %997 = vmatmul.mubr.msk.f32.vlgmr.msra.gmra.mrb[8].mxu1 %vm47_vm0, %v1179_v31 }
 0x10d   :  { %1041 = vmatpush3.bf16.msra.mxu1 %v1040_v55  ;;  %1003 = vmatprep.mubr.msk.f32.mxu1 %vm1107_vm1, %v1108_v20  ;;  %v706_v56 = vld [vmem:[#allocation2 + $0x68] sm:$0xff] }
 0x10e   :  { %1042 = vmatprep.subr.bf16.mxu1 %v1106_v19  ;;  %v705_v57 = vld [vmem:[#allocation2 + $0x60] sm:$0xff] }
 0x10f   :  { %v1043_v58 = vpack.c.bf16 %v706_v56, %v705_v57 }
 0x110   :  { %1004 = vmatmul.mubr.msk.f32.vlgmr.msra.gmra.mrb[10].mxu1 %vm47_vm0, %v1179_v31 }
 0x111   :  { %1044 = vmatpush3.bf16.msra.mxu1 %v1043_v58  ;;  %1010 = vmatprep.mubr.msk.f32.mxu1 %vm1107_vm1, %v1108_v20  ;;  %v780_v59 = vld [vmem:[#allocation2 + $0x78] sm:$0xff] }
 0x112   :  { %1045 = vmatprep.subr.bf16.mxu1 %v1106_v19  ;;  %v779_v60 = vld [vmem:[#allocation2 + $0x70] sm:$0xff] }
 0x113   :  { %v1046_v61 = vpack.c.bf16 %v780_v59, %v779_v60 }
 0x114   :  { %1011 = vmatmul.mubr.msk.f32.vlgmr.msra.gmra.mrb[12].mxu1 %vm47_vm0, %v1179_v31 }
 0x115   :  { %1047 = vmatpush3.bf16.msra.mxu1 %v1046_v61  ;;  %1017 = vmatprep.mubr.msk.f32.mxu1 %vm1107_vm1, %v1108_v20 }
 0x118   :  { %1018 = vmatmul.mubr.msk.f32.vlgmr.msra.gmra.mrb[14].mxu1 %vm47_vm0, %v1179_v31 }
 0x1cf   :  { %v330_v62 = vpop.f32.mrb[0].mxu1 }
 0x1d0   :  { %334 = vst.msk [vmem:[#allocation6] sm:$0xff] %vm241_vm2, %v330_v62  ;;  %v970_v63 = vpop.f32.mrb[1].mxu1 }
 0x1d3   :  { %v403_v0 = vpop.f32.mrb[2].mxu1 }
 0x1d4   :  { %408 = vst.msk [vmem:[#allocation6 + $0x8] sm:$0xff] %vm241_vm2, %v403_v0  ;;  %v977_v1 = vpop.f32.mrb[3].mxu1 }
 0x1d7   :  { %v477_v2 = vpop.f32.mrb[4].mxu1 }
 0x1d8   :  { %482 = vst.msk [vmem:[#allocation6 + $0x10] sm:$0xff] %vm241_vm2, %v477_v2  ;;  %v984_v3 = vpop.f32.mrb[5].mxu1 }
 0x1db   :  { %v551_v4 = vpop.f32.mrb[6].mxu1 }
 0x1dc   :  { %556 = vst.msk [vmem:[#allocation6 + $0x18] sm:$0xff] %vm241_vm2, %v551_v4  ;;  %v991_v5 = vpop.f32.mrb[7].mxu1 }
 0x1df   :  { %v625_v6 = vpop.f32.mrb[8].mxu1 }
 0x1e0   :  { %630 = vst.msk [vmem:[#allocation6 + $0x20] sm:$0xff] %vm241_vm2, %v625_v6  ;;  %v998_v7 = vpop.f32.mrb[9].mxu1 }
 0x1e3   :  { %v699_v8 = vpop.f32.mrb[10].mxu1 }
 0x1e4   :  { %704 = vst.msk [vmem:[#allocation6 + $0x28] sm:$0xff] %vm241_vm2, %v699_v8  ;;  %v1005_v9 = vpop.f32.mrb[11].mxu1 }
 0x1e7   :  { %v773_v10 = vpop.f32.mrb[12].mxu1 }
 0x1e8   :  { %778 = vst.msk [vmem:[#allocation6 + $0x30] sm:$0xff] %vm241_vm2, %v773_v10  ;;  %v1012_v11 = vpop.f32.mrb[13].mxu1 }
 0x1eb   :  { %v847_v12 = vpop.f32.mrb[14].mxu1 }
 0x1ec   :  { %852 = vst.msk [vmem:[#allocation6 + $0x38] sm:$0xff] %vm241_vm2, %v847_v12  ;;  %v1019_v13 = vpop.f32.mrb[15].mxu1 }
 0x1ed   :  { %1088 = shalt.err (!%p1085_p12)
}
 0x1ee   :  { %s1089_s7 = scalar_lea.hbm %s1254_s3, 1024 }
 0x1ef   :  { %p1090_p13 = scmp.ne.s32.totalorder %s1254_s3, %s1089_s7  ;;  %p1093_p0 = scmp.lt.u32.totalorder %s1089_s7, %s1254_s3 }
 0x1f1   :  { %p1095_p1 = pnand %p1093_p0, %p1090_p13 }
 0x1f3   :  { %1098 = shalt.err (!%p1095_p1)
}
 0x1f4   :  { %864 = dma.vmem_to_hbm [thread:$0]  %s859_s30, 1024, %s1254_s3, [#allocation5], %s1104_s22, %s1104_s22, %s1105_s23  }
 0x1f5   :  { %1101 = dma.done.wait [#allocation5], 1024  }
 0x1f6   :  { %1102 = vsyncadd [#allocation5], 4294966272 }
 0x1f7   :  { %868 = vsyncpa [#allocation4], 1 }
 0x1f8   :  { %869 = vsyncpa [#allocation5], 1 }

</bundles_post_ra>
